<compile_context>
chip_gen: v7x
topology: tpu7x:2x2x1
jax: 0.10.0
libtpu: 0.0.40
codegen_flags: <defaults>
</compile_context>

<pallas_src>
import jax
import jax.numpy as jnp
from jax.experimental import pallas as pl
from jax.experimental.pallas import tpu as pltpu

VOCAB = 21          # embedding rows (padding_idx = 0)
EMB_D = 128         # embedding width / fc2 output width
HID = 10            # fc1 output / fc2 input width
VPAD = 24           # vocab padded to a sublane multiple; column VOCAB = fc1-bias pseudo-token
W2ROWS = 16         # HID padded to 16 sublanes; row HID holds b2 (fc2-bias pseudo-row)

# Packed parameter buffer (f32, 256 lanes wide, 40 rows total = 40 KiB):
_R_EMBE1 = 0                 # rows [ 0, 24): lanes [0:128)=emb, lanes [128:128+HID)=emb@w1 (+b1 in row VOCAB)
_R_W2B = VPAD                # rows [24, 40): lanes [0:128)=w2 (rows 0..9) and b2 (row HID); rest zero
_R_TOT = VPAD + W2ROWS       # 40 rows


def _model_kernel(idx_ref, params_ref, out_ref):
    # idx_ref    : (S, B) int32 in SMEM (scalar reads)
    # params_ref : (40, 256) f32 in VMEM
    # out_ref    : (B, 256) f32 in VMEM; lanes [0:128)=fc2 out, [128:256)=a
    S = idx_ref.shape[0]
    B = out_ref.shape[0]

    # counts[b, v] = #{s : x[s, b] == v}; column VOCAB is a constant
    # pseudo-token of weight 1 that injects the fc1 bias via the e1b block.
    viota = jax.lax.broadcasted_iota(jnp.int32, (B, VPAD), 1)
    biota = jax.lax.broadcasted_iota(jnp.int32, (B, VPAD), 0)
    counts = (viota == VOCAB).astype(jnp.float32)
    bmasks = [biota == b for b in range(B)]
    for s in range(S):              # tiny static S*B -> unrolled VPU compare+add
        for b in range(B):
            tok = idx_ref[s, b]     # scalar read from SMEM (no transpose needed)
            counts = counts + (bmasks[b] & (viota == tok)).astype(jnp.float32)

    emb_e1b = params_ref[_R_EMBE1:_R_EMBE1 + VPAD, :]             # (24, 256)
    w2b = params_ref[_R_W2B:_R_W2B + W2ROWS, 0:EMB_D]             # (16, 128)

    # One fused MXU pass: a = counts @ emb (exact; counts are integers) and
    # pre_h = counts @ (emb @ w1) + b1, side by side on the 256-lane RHS.
    ah = jnp.dot(counts, emb_e1b, preferred_element_type=jnp.float32)   # (B, 256)
    a = ah[:, 0:EMB_D]                                                   # (B, 128)
    pre_h = ah[:, EMB_D:EMB_D + W2ROWS]                                  # (B, 16); lanes >= HID are 0

    h = jnp.tanh(pre_h)
    # Force lane HID to 1.0 so pseudo-row HID of w2b adds the fc2 bias b2.
    hiota = jax.lax.broadcasted_iota(jnp.int32, (B, W2ROWS), 1)
    h = jnp.where(hiota == HID, jnp.float32(1.0), h)

    out = jnp.dot(h, w2b, preferred_element_type=jnp.float32)            # (B, 128)

    out_ref[:, 0:EMB_D] = out
    out_ref[:, EMB_D:2 * EMB_D] = a


def pack_params(emb, w1, b1, w2, b2):
    """Pack all parameters into a single 128-lane-aligned f32 buffer (one DMA)."""
    emb = emb.astype(jnp.float32)
    w1 = w1.astype(jnp.float32)
    b1 = jnp.reshape(b1, (-1,)).astype(jnp.float32)
    w2 = w2.astype(jnp.float32)
    b2 = jnp.reshape(b2, (-1,)).astype(jnp.float32)

    e1 = emb @ w1                                                   # (21, 10) precomputed

    top = jnp.zeros((VPAD, 2 * EMB_D), jnp.float32)
    top = top.at[:VOCAB, :EMB_D].set(emb)                           # emb (lanes 0..127)
    top = top.at[:VOCAB, EMB_D:EMB_D + HID].set(e1)                 # emb@w1 (lanes 128..137)
    top = top.at[VOCAB, EMB_D:EMB_D + HID].set(b1)                  # fc1 bias pseudo-token row

    bot = jnp.zeros((W2ROWS, 2 * EMB_D), jnp.float32)
    bot = bot.at[:HID, :EMB_D].set(w2)                              # fc2 weight (10 rows)
    bot = bot.at[HID, :EMB_D].set(b2)                               # fc2 bias pseudo-row

    packed = jnp.concatenate([top, bot], axis=0)                    # (40, 256)
    assert packed.shape == (_R_TOT, 2 * EMB_D)
    return packed


@jax.jit
def my_model_forward(x_idx, packed_params):
    """x_idx: (S, B) int indices in [0, VOCAB). Returns (out (B,128), a (B,128)).

    NOTE: indices outside [0, VOCAB) are not checked (PyTorch would raise);
    index == VOCAB would double-inject the fc1 bias, indices >= VPAD or < 0
    are silently dropped from the counts.
    """
    S, B = x_idx.shape
    fused = pl.pallas_call(
        _model_kernel,
        out_shape=jax.ShapeDtypeStruct((B, 2 * EMB_D), jnp.float32),
        in_specs=[
            pl.BlockSpec(memory_space=pltpu.MemorySpace.SMEM),   # indices -> SMEM scalars
            pl.BlockSpec(memory_space=pltpu.MemorySpace.VMEM),   # packed params (40 KiB)
        ],
        out_specs=pl.BlockSpec(memory_space=pltpu.MemorySpace.VMEM),
    )(x_idx.astype(jnp.int32), packed_params)
    out = fused[:, :EMB_D]
    a = fused[:, EMB_D:]
    return out, a


def init_params(key):
    k_emb, k_w1, k_b1, k_w2, k_b2 = jax.random.split(key, 5)
    # Embedding ~ N(0,1), with padding_idx=0 row zeroed (torch semantics).
    emb = jax.random.normal(k_emb, (VOCAB, EMB_D), jnp.float32)
    emb = emb.at[0].set(0.0)
    # Linear layers: uniform(-1/sqrt(fan_in), 1/sqrt(fan_in)), stored as (in, out).
    lim1 = 1.0 / jnp.sqrt(jnp.float32(EMB_D))
    w1 = jax.random.uniform(k_w1, (EMB_D, HID), jnp.float32, -lim1, lim1)
    b1 = jax.random.uniform(k_b1, (1, HID), jnp.float32, -lim1, lim1)
    lim2 = 1.0 / jnp.sqrt(jnp.float32(HID))
    w2 = jax.random.uniform(k_w2, (HID, EMB_D), jnp.float32, -lim2, lim2)
    b2 = jax.random.uniform(k_b2, (1, EMB_D), jnp.float32, -lim2, lim2)
    return emb, w1, b1, w2, b2


if __name__ == "__main__":
    key = jax.random.PRNGKey(0)
    k_x, k_p = jax.random.split(key)

    S, B = 8, 2  # sequence length, batch (torch sums over dim=0 = sequence)
    x_idx = jax.random.randint(k_x, (S, B), 0, VOCAB, dtype=jnp.int32)
    emb, w1, b1, w2, b2 = init_params(k_p)
    packed = pack_params(emb, w1, b1, w2, b2)

    out, a = my_model_forward(x_idx, packed)
    out, a = jax.block_until_ready((out, a))

    # Reference check in plain JAX (embedding gather + sum + MLP).
    a_ref = jnp.sum(emb[x_idx], axis=0)                   # (B, 128)
    h_ref = jnp.tanh(a_ref @ w1 + b1)
    out_ref = h_ref @ w2 + b2
    assert jnp.allclose(a, a_ref, atol=1e-4, rtol=1e-4)
    assert jnp.allclose(out, out_ref, atol=1e-4, rtol=1e-4)

    print("KERNEL_OK")
</pallas_src>

<mosaic_0001>
module attributes {stable_mosaic.version = 11 : i64} {
  func.func @_model_kernel(%arg0: memref<8x2xi32, #tpu.memory_space<smem>>, %arg1: memref<40x256xf32, #tpu.memory_space<vmem>>, %arg2: memref<2x256xf32, #tpu.memory_space<vmem>>) attributes {dimension_semantics = [], scalar_prefetch = 0 : i64, scratch_operands = 0 : i64, tpu.core_type = #tpu.core_type<tc>} {
    %0 = tpu.iota {dimensions = array<i32: 1>} : vector<2x24xi32>
    %1 = tpu.iota {dimensions = array<i32: 0>} : vector<2x24xi32>
    %c21_i32 = arith.constant 21 : i32
    %2 = vector.broadcast %c21_i32 : i32 to vector<2x24xi32>
    %3 = arith.cmpi eq, %0, %2 : vector<2x24xi32>
    %4 = arith.extui %3 : vector<2x24xi1> to vector<2x24xi32>
    %5 = arith.sitofp %4 : vector<2x24xi32> to vector<2x24xf32>
    %c0_i32 = arith.constant 0 : i32
    %6 = vector.broadcast %c0_i32 : i32 to vector<2x24xi32>
    %7 = arith.cmpi eq, %1, %6 : vector<2x24xi32>
    %c1_i32 = arith.constant 1 : i32
    %8 = vector.broadcast %c1_i32 : i32 to vector<2x24xi32>
    %9 = arith.cmpi eq, %1, %8 : vector<2x24xi32>
    %c0 = arith.constant 0 : index
    %c0_0 = arith.constant 0 : index
    %10 = memref.load %arg0[%c0, %c0_0] : memref<8x2xi32, #tpu.memory_space<smem>>
    %11 = vector.broadcast %10 : i32 to vector<2x24xi32>
    %12 = arith.cmpi eq, %0, %11 : vector<2x24xi32>
    %13 = arith.andi %7, %12 : vector<2x24xi1>
    %14 = arith.extui %13 : vector<2x24xi1> to vector<2x24xi32>
    %15 = arith.sitofp %14 : vector<2x24xi32> to vector<2x24xf32>
    %16 = arith.addf %5, %15 : vector<2x24xf32>
    %c0_1 = arith.constant 0 : index
    %c1 = arith.constant 1 : index
    %17 = memref.load %arg0[%c0_1, %c1] : memref<8x2xi32, #tpu.memory_space<smem>>
    %18 = vector.broadcast %17 : i32 to vector<2x24xi32>
    %19 = arith.cmpi eq, %0, %18 : vector<2x24xi32>
    %20 = arith.andi %9, %19 : vector<2x24xi1>
    %21 = arith.extui %20 : vector<2x24xi1> to vector<2x24xi32>
    %22 = arith.sitofp %21 : vector<2x24xi32> to vector<2x24xf32>
    %23 = arith.addf %16, %22 : vector<2x24xf32>
    %c1_2 = arith.constant 1 : index
    %c0_3 = arith.constant 0 : index
    %24 = memref.load %arg0[%c1_2, %c0_3] : memref<8x2xi32, #tpu.memory_space<smem>>
    %25 = vector.broadcast %24 : i32 to vector<2x24xi32>
    %26 = arith.cmpi eq, %0, %25 : vector<2x24xi32>
    %27 = arith.andi %7, %26 : vector<2x24xi1>
    %28 = arith.extui %27 : vector<2x24xi1> to vector<2x24xi32>
    %29 = arith.sitofp %28 : vector<2x24xi32> to vector<2x24xf32>
    %30 = arith.addf %23, %29 : vector<2x24xf32>
    %c1_4 = arith.constant 1 : index
    %c1_5 = arith.constant 1 : index
    %31 = memref.load %arg0[%c1_4, %c1_5] : memref<8x2xi32, #tpu.memory_space<smem>>
    %32 = vector.broadcast %31 : i32 to vector<2x24xi32>
    %33 = arith.cmpi eq, %0, %32 : vector<2x24xi32>
    %34 = arith.andi %9, %33 : vector<2x24xi1>
    %35 = arith.extui %34 : vector<2x24xi1> to vector<2x24xi32>
    %36 = arith.sitofp %35 : vector<2x24xi32> to vector<2x24xf32>
    %37 = arith.addf %30, %36 : vector<2x24xf32>
    %c2 = arith.constant 2 : index
    %c0_6 = arith.constant 0 : index
    %38 = memref.load %arg0[%c2, %c0_6] : memref<8x2xi32, #tpu.memory_space<smem>>
    %39 = vector.broadcast %38 : i32 to vector<2x24xi32>
    %40 = arith.cmpi eq, %0, %39 : vector<2x24xi32>
    %41 = arith.andi %7, %40 : vector<2x24xi1>
    %42 = arith.extui %41 : vector<2x24xi1> to vector<2x24xi32>
    %43 = arith.sitofp %42 : vector<2x24xi32> to vector<2x24xf32>
    %44 = arith.addf %37, %43 : vector<2x24xf32>
    %c2_7 = arith.constant 2 : index
    %c1_8 = arith.constant 1 : index
    %45 = memref.load %arg0[%c2_7, %c1_8] : memref<8x2xi32, #tpu.memory_space<smem>>
    %46 = vector.broadcast %45 : i32 to vector<2x24xi32>
    %47 = arith.cmpi eq, %0, %46 : vector<2x24xi32>
    %48 = arith.andi %9, %47 : vector<2x24xi1>
    %49 = arith.extui %48 : vector<2x24xi1> to vector<2x24xi32>
    %50 = arith.sitofp %49 : vector<2x24xi32> to vector<2x24xf32>
    %51 = arith.addf %44, %50 : vector<2x24xf32>
    %c3 = arith.constant 3 : index
    %c0_9 = arith.constant 0 : index
    %52 = memref.load %arg0[%c3, %c0_9] : memref<8x2xi32, #tpu.memory_space<smem>>
    %53 = vector.broadcast %52 : i32 to vector<2x24xi32>
    %54 = arith.cmpi eq, %0, %53 : vector<2x24xi32>
    %55 = arith.andi %7, %54 : vector<2x24xi1>
    %56 = arith.extui %55 : vector<2x24xi1> to vector<2x24xi32>
    %57 = arith.sitofp %56 : vector<2x24xi32> to vector<2x24xf32>
    %58 = arith.addf %51, %57 : vector<2x24xf32>
    %c3_10 = arith.constant 3 : index
    %c1_11 = arith.constant 1 : index
    %59 = memref.load %arg0[%c3_10, %c1_11] : memref<8x2xi32, #tpu.memory_space<smem>>
    %60 = vector.broadcast %59 : i32 to vector<2x24xi32>
    %61 = arith.cmpi eq, %0, %60 : vector<2x24xi32>
    %62 = arith.andi %9, %61 : vector<2x24xi1>
    %63 = arith.extui %62 : vector<2x24xi1> to vector<2x24xi32>
    %64 = arith.sitofp %63 : vector<2x24xi32> to vector<2x24xf32>
    %65 = arith.addf %58, %64 : vector<2x24xf32>
    %c4 = arith.constant 4 : index
    %c0_12 = arith.constant 0 : index
    %66 = memref.load %arg0[%c4, %c0_12] : memref<8x2xi32, #tpu.memory_space<smem>>
    %67 = vector.broadcast %66 : i32 to vector<2x24xi32>
    %68 = arith.cmpi eq, %0, %67 : vector<2x24xi32>
    %69 = arith.andi %7, %68 : vector<2x24xi1>
    %70 = arith.extui %69 : vector<2x24xi1> to vector<2x24xi32>
    %71 = arith.sitofp %70 : vector<2x24xi32> to vector<2x24xf32>
    %72 = arith.addf %65, %71 : vector<2x24xf32>
    %c4_13 = arith.constant 4 : index
    %c1_14 = arith.constant 1 : index
    %73 = memref.load %arg0[%c4_13, %c1_14] : memref<8x2xi32, #tpu.memory_space<smem>>
    %74 = vector.broadcast %73 : i32 to vector<2x24xi32>
    %75 = arith.cmpi eq, %0, %74 : vector<2x24xi32>
    %76 = arith.andi %9, %75 : vector<2x24xi1>
    %77 = arith.extui %76 : vector<2x24xi1> to vector<2x24xi32>
    %78 = arith.sitofp %77 : vector<2x24xi32> to vector<2x24xf32>
    %79 = arith.addf %72, %78 : vector<2x24xf32>
    %c5 = arith.constant 5 : index
    %c0_15 = arith.constant 0 : index
    %80 = memref.load %arg0[%c5, %c0_15] : memref<8x2xi32, #tpu.memory_space<smem>>
    %81 = vector.broadcast %80 : i32 to vector<2x24xi32>
    %82 = arith.cmpi eq, %0, %81 : vector<2x24xi32>
    %83 = arith.andi %7, %82 : vector<2x24xi1>
    %84 = arith.extui %83 : vector<2x24xi1> to vector<2x24xi32>
    %85 = arith.sitofp %84 : vector<2x24xi32> to vector<2x24xf32>
    %86 = arith.addf %79, %85 : vector<2x24xf32>
    %c5_16 = arith.constant 5 : index
    %c1_17 = arith.constant 1 : index
    %87 = memref.load %arg0[%c5_16, %c1_17] : memref<8x2xi32, #tpu.memory_space<smem>>
    %88 = vector.broadcast %87 : i32 to vector<2x24xi32>
    %89 = arith.cmpi eq, %0, %88 : vector<2x24xi32>
    %90 = arith.andi %9, %89 : vector<2x24xi1>
    %91 = arith.extui %90 : vector<2x24xi1> to vector<2x24xi32>
    %92 = arith.sitofp %91 : vector<2x24xi32> to vector<2x24xf32>
    %93 = arith.addf %86, %92 : vector<2x24xf32>
    %c6 = arith.constant 6 : index
    %c0_18 = arith.constant 0 : index
    %94 = memref.load %arg0[%c6, %c0_18] : memref<8x2xi32, #tpu.memory_space<smem>>
    %95 = vector.broadcast %94 : i32 to vector<2x24xi32>
    %96 = arith.cmpi eq, %0, %95 : vector<2x24xi32>
    %97 = arith.andi %7, %96 : vector<2x24xi1>
    %98 = arith.extui %97 : vector<2x24xi1> to vector<2x24xi32>
    %99 = arith.sitofp %98 : vector<2x24xi32> to vector<2x24xf32>
    %100 = arith.addf %93, %99 : vector<2x24xf32>
    %c6_19 = arith.constant 6 : index
    %c1_20 = arith.constant 1 : index
    %101 = memref.load %arg0[%c6_19, %c1_20] : memref<8x2xi32, #tpu.memory_space<smem>>
    %102 = vector.broadcast %101 : i32 to vector<2x24xi32>
    %103 = arith.cmpi eq, %0, %102 : vector<2x24xi32>
    %104 = arith.andi %9, %103 : vector<2x24xi1>
    %105 = arith.extui %104 : vector<2x24xi1> to vector<2x24xi32>
    %106 = arith.sitofp %105 : vector<2x24xi32> to vector<2x24xf32>
    %107 = arith.addf %100, %106 : vector<2x24xf32>
    %c7 = arith.constant 7 : index
    %c0_21 = arith.constant 0 : index
    %108 = memref.load %arg0[%c7, %c0_21] : memref<8x2xi32, #tpu.memory_space<smem>>
    %109 = vector.broadcast %108 : i32 to vector<2x24xi32>
    %110 = arith.cmpi eq, %0, %109 : vector<2x24xi32>
    %111 = arith.andi %7, %110 : vector<2x24xi1>
    %112 = arith.extui %111 : vector<2x24xi1> to vector<2x24xi32>
    %113 = arith.sitofp %112 : vector<2x24xi32> to vector<2x24xf32>
    %114 = arith.addf %107, %113 : vector<2x24xf32>
    %c7_22 = arith.constant 7 : index
    %c1_23 = arith.constant 1 : index
    %115 = memref.load %arg0[%c7_22, %c1_23] : memref<8x2xi32, #tpu.memory_space<smem>>
    %116 = vector.broadcast %115 : i32 to vector<2x24xi32>
    %117 = arith.cmpi eq, %0, %116 : vector<2x24xi32>
    %118 = arith.andi %9, %117 : vector<2x24xi1>
    %119 = arith.extui %118 : vector<2x24xi1> to vector<2x24xi32>
    %120 = arith.sitofp %119 : vector<2x24xi32> to vector<2x24xf32>
    %121 = arith.addf %114, %120 : vector<2x24xf32>
    %c0_24 = arith.constant 0 : index
    %c0_25 = arith.constant 0 : index
    %122 = vector.load %arg1[%c0_24, %c0_25] : memref<40x256xf32, #tpu.memory_space<vmem>>, vector<24x256xf32>
    %c24 = arith.constant 24 : index
    %c0_26 = arith.constant 0 : index
    %123 = vector.load %arg1[%c24, %c0_26] : memref<40x256xf32, #tpu.memory_space<vmem>>, vector<16x128xf32>
    %cst = arith.constant dense<0.000000e+00> : vector<2x256xf32>
    %124 = tpu.matmul %121, %122, %cst {dimension_numbers = #tpu.dot_dimension_numbers<[1], [0], [0], [1], [0, 0, 1, 1], [], []>} : vector<2x24xf32>, vector<24x256xf32>, vector<2x256xf32> -> vector<2x256xf32>
    %125 = vector.extract_strided_slice %124 {offsets = [0, 0], sizes = [2, 128], strides = [1, 1]} : vector<2x256xf32> to vector<2x128xf32>
    %126 = vector.extract_strided_slice %124 {offsets = [0, 128], sizes = [2, 16], strides = [1, 1]} : vector<2x256xf32> to vector<2x16xf32>
    %127 = math.tanh %126 : vector<2x16xf32>
    %128 = tpu.iota {dimensions = array<i32: 1>} : vector<2x16xi32>
    %c10_i32 = arith.constant 10 : i32
    %129 = vector.broadcast %c10_i32 : i32 to vector<2x16xi32>
    %130 = arith.cmpi eq, %128, %129 : vector<2x16xi32>
    %cst_27 = arith.constant 1.000000e+00 : f32
    %131 = vector.broadcast %cst_27 : f32 to vector<2x16xf32>
    %132 = arith.select %130, %131, %127 : vector<2x16xi1>, vector<2x16xf32>
    %cst_28 = arith.constant dense<0.000000e+00> : vector<2x128xf32>
    %133 = tpu.matmul %132, %123, %cst_28 {dimension_numbers = #tpu.dot_dimension_numbers<[1], [0], [0], [1], [0, 0, 1, 1], [], []>} : vector<2x16xf32>, vector<16x128xf32>, vector<2x128xf32> -> vector<2x128xf32>
    %c0_29 = arith.constant 0 : index
    %c0_30 = arith.constant 0 : index
    %134 = vector.load %arg2[%c0_29, %c0_30] : memref<2x256xf32, #tpu.memory_space<vmem>>, vector<2x128xf32>
    tpu.vector_store %arg2[%c0_29, %c0_30], %133 {strides = array<i32>} : memref<2x256xf32, #tpu.memory_space<vmem>>, vector<2x128xf32>,
    %c0_31 = arith.constant 0 : index
    %c128 = arith.constant 128 : index
    %135 = vector.load %arg2[%c0_31, %c128] : memref<2x256xf32, #tpu.memory_space<vmem>>, vector<2x128xf32>
    tpu.vector_store %arg2[%c0_31, %c128], %125 {strides = array<i32>} : memref<2x256xf32, #tpu.memory_space<vmem>>, vector<2x128xf32>,
    return
  }
}

</mosaic_0001>

<bundles_post_ra>
// kernel: my_model_forward.1
= control target key start
LH: loop header
LB: loop body
LE: loop exit
PB: predicated region body
PF: predicated region fallthrough
CT: control target
= control target key end

     0   :  { %7 = vsyncpa [#allocation4], 0  ;;  %s564_s0 = inlined_call_operand.vmem [shape: s32[8,2], index: 0, kind: input, shape index: {}]   ;;  %s565_s1 = inlined_call_operand.hbm [shape: f32[40,256], index: 1, kind: input, shape index: {}]   ;;  %s566_s2 = inlined_call_operand.vmem [shape: f32[2,256], index: 2, kind: output, shape index: {}]  }
   0x1   :  { %s15_s11 = sshll.u32 %s564_s0, 4  ;;  %s16_s11 = int_to_ptr.vmem [resolvable:$true] %s15_s11 }
   0x2   :  { %8 = vsyncpa [#allocation3], 0  ;;  %s387_s12 = scalar_lea.vmem %s16_s11, 128  ;;  %p392_p1 = scmp.lt.s32.totalorder %s16_s11, %s16_s11 }
   0x3   :  { %p388_p0 = scmp.ne.s32.totalorder %s16_s11, %s387_s12  ;;  %p393_p2 = scmp.lt.s32.totalorder %s387_s12, %s387_s12 }
   0x5   :  { %p394_p3 = por %p393_p2, %p392_p1 }
   0x7   :  { %p395_p4 = pnand %p394_p3, %p388_p0 }
   0x9   :  { %398 = shalt.err (!%p395_p4)
}
   0xa   :  { %s425_s13 = smov [#allocation2]   ;;  %s426_s14 = smov [#allocation5]  }
   0xb   :  { %18 = dma.vmem_to_smem %s16_s11, 128, %s425_s13, [#allocation4]  }
   0xc   :  { %s24_s15 = sshll.u32 %s426_s14, 4  ;;  %s399_s18 = scalar_lea.hbm %s565_s1, 1280  ;;  %s25_s15 = int_to_ptr.vmem [resolvable:$true] %s24_s15 }
   0xd   :  { %p400_p5 = scmp.ne.s32.totalorder %s565_s1, %s399_s18  ;;  %p403_p6 = scmp.lt.u32.totalorder %s399_s18, %s565_s1 }
   0xf   :  { %p405_p7 = pnand %p403_p6, %p400_p5 }
  0x11   :  { %408 = shalt.err (!%p405_p7)
}
  0x12   :  { %s409_s22 = scalar_lea.vmem %s25_s15, 1280  ;;  %p414_p9 = scmp.lt.s32.totalorder %s25_s15, %s25_s15 }
  0x13   :  { %p410_p8 = scmp.ne.s32.totalorder %s25_s15, %s409_s22  ;;  %p415_p10 = scmp.lt.s32.totalorder %s409_s22, %s409_s22 }
  0x15   :  { %p416_p11 = por %p415_p10, %p414_p9 }
  0x17   :  { %p417_p12 = pnand %p416_p11, %p410_p8 }
  0x19   :  { %420 = shalt.err (!%p417_p12)
}
  0x1a   :  { %s427_s23 = smov 256   ;;  %s428_s24 = smov 16  }
  0x1b   :  { %30 = dma.hbm_to_vmem [thread:$0]  %s565_s1, 1280, %s25_s15, [#allocation3], %s427_s23, %s427_s23, %s428_s24  }
  0x1c   :  { %421 = dma.done.wait [#allocation4], 128  }
  0x1d   :  { %422 = vsyncadd [#allocation4], 4294967168 }
  0x1e   :  { %423 = dma.done.wait [#allocation3], 1280  }
  0x1f   :  { %424 = vsyncadd [#allocation3], 4294966016 }
  0x20   :  { %37 = sfence }
  0x21   :  { %v160_v0 = vld [vmem:[#allocation5 + $0x8] sm:$0xff]  ;;  %v162_v1 = vld [vmem:[#allocation5 + $0x18] sm:$0xff]  ;;  %v159_v2 = vld [vmem:[#allocation5] sm:$0xff]  ;;  %v38_v3 = vlaneseq  ;;  %s47_s27 = sld [smem:[#allocation2]]  ;;  %v429_v7 = vmov 0.0   ;;  %s329_s28 = sld [smem:[#allocation2 + $0x1]] }
  0x22   :  { %v371_v4 = vpack.c.bf16 %v162_v1, %v160_v0  ;;  %v161_v5 = vld [vmem:[#allocation5 + $0x10] sm:$0xff]  ;;  %v164_v6 = vld [vmem:[#allocation5 + $0x28] sm:$0xff]  ;;  %235 = vmatprep.mubr.f32.mxu0 %v429_v7  ;;  %s331_s1 = sld [smem:[#allocation2 + $0x80]]  ;;  %s333_s29 = sld [smem:[#allocation2 + $0x81]]  ;;  %v163_v11 = vld [vmem:[#allocation5 + $0x20] sm:$0xff]  ;;  %v430_v63 = vmov 0.0|0.0  }
  0x23   :  { %v373_v8 = vpack.c.bf16 %v161_v5, %v159_v2  ;;  %v463_v9 = vand.u32 127, %v38_v3  ;;  %v465_v10 = vshrl.u32 %v38_v3, 7  ;;  %s335_s30 = sld [smem:[#allocation2 + $0x100]]  ;;  %s467_s3 = sld [smem:[#allocation2 + $0x101]]  ;;  %v165_v61 = vld [vmem:[#allocation5 + $0x30] sm:$0xff]  ;;  %v166_v62 = vld [vmem:[#allocation5 + $0x40] sm:$0xff]  ;;  %375 = vmatprep.subr.bf16.mxu1 %v430_v63 }
  0x24   :  { %372 = vmatprep.subr.bf16.mxu0 %v371_v4  ;;  %s470_s4 = sld [smem:[#allocation2 + $0x180]]  ;;  %s473_s5 = sld [smem:[#allocation2 + $0x181]]  ;;  %v376_v0 = vpack.c.bf16 %v166_v62, %v165_v61 }
  0x25   :  { %374 = vmatpush1.bf16.msra.mxu0 %v373_v8  ;;  %vm42_vm0 = vcmp.eq.s32.totalorder %v463_v9, 21  ;;  %vm45_vm1 = vcmp.eq.s32.totalorder %v465_v10, 0  ;;  %vm46_vm2 = vcmp.eq.s32.totalorder %v465_v10, 1  ;;  %s476_s6 = sld [smem:[#allocation2 + $0x200]]  ;;  %s483_s7 = sld [smem:[#allocation2 + $0x201]] }
  0x26   :  { %175 = vmatprep.subr.mxu0 %v164_v6  ;;  %v327_v13 = vsel %vm42_vm0, 1.0, %v429_v7  ;;  %s495_s8 = sld [smem:[#allocation2 + $0x280]]  ;;  %s505_s9 = sld [smem:[#allocation2 + $0x281]]  ;;  %377 = vmatpush3.bf16.msra.mxu1 %v376_v0 }
  0x27   :  { %v48_v12 = vstv %s47_s27  ;;  %v55_v14 = vstv %s329_s28  ;;  %s351_s10 = sld [smem:[#allocation2 + $0x300]]  ;;  %s353_s11 = sld [smem:[#allocation2 + $0x301]] }
  0x28   :  { %vm49_vm3 = vcmp.eq.s32.totalorder %v463_v9, %v48_v12  ;;  %vm56_vm5 = vcmp.eq.s32.totalorder %v463_v9, %v55_v14  ;;  %v62_v15 = vstv %s331_s1  ;;  %v69_v16 = vstv %s333_s29  ;;  %s355_s12 = sld [smem:[#allocation2 + $0x380]]  ;;  %s357_s13 = sld [smem:[#allocation2 + $0x381]] }
  0x29   :  { %176 = vmatpush1.msra.mxu0 %v163_v11  ;;  %vm50_vm4 = vmand %vm45_vm1, %vm49_vm3  ;;  %vm63_vm7 = vcmp.eq.s32.totalorder %v463_v9, %v62_v15  ;;  %vm70_vm8 = vcmp.eq.s32.totalorder %v463_v9, %v69_v16  ;;  %v76_v18 = vstv %s335_s30  ;;  %v83_v21 = vstv %s467_s3 }
  0x2a   :  { %v328_v17 = vsel %vm50_vm4, 1.0, %v429_v7  ;;  %vm57_vm6 = vmand %vm46_vm2, %vm56_vm5  ;;  %vm77_vm10 = vcmp.eq.s32.totalorder %v463_v9, %v76_v18  ;;  %vm84_vm12 = vcmp.eq.s32.totalorder %v463_v9, %v83_v21  ;;  %v90_v23 = vstv %s470_s4 }
  0x2b   :  { %v53_v19 = vadd.f32 %v328_v17, %v327_v13  ;;  %v330_v20 = vsel %vm57_vm6, 1.0, %v429_v7  ;;  %vm64_vm9 = vmand %vm45_vm1, %vm63_vm7  ;;  %v97_v25 = vstv %s473_s5  ;;  %vm91_vm14 = vcmp.eq.s32.totalorder %v463_v9, %v90_v23 }
  0x2c   :  { %v332_v22 = vsel %vm64_vm9, 1.0, %v429_v7  ;;  %vm71_vm11 = vmand %vm46_vm2, %vm70_vm8  ;;  %v104_v28 = vstv %s476_s6  ;;  %vm98_vm0 = vcmp.eq.s32.totalorder %v463_v9, %v97_v25  ;;  %v111_v31 = vstv %s483_s7 }
  0x2d   :  { %v60_v24 = vadd.f32 %v330_v20, %v53_v19  ;;  %vm78_vm13 = vmand %vm45_vm1, %vm77_vm10  ;;  %v334_v26 = vsel %vm71_vm11, 1.0, %v429_v7  ;;  %vm105_vm4 = vcmp.eq.s32.totalorder %v463_v9, %v104_v28  ;;  %v118_v34 = vstv %s495_s8 }
  0x2e   :  { %vm85_vm15 = vmand %vm46_vm2, %vm84_vm12  ;;  %v336_v29 = vsel %vm78_vm13, 1.0, %v429_v7  ;;  %vm112_vm6 = vcmp.eq.s32.totalorder %v463_v9, %v111_v31  ;;  %v125_v37 = vstv %s505_s9  ;;  %vm119_vm8 = vcmp.eq.s32.totalorder %v463_v9, %v118_v34 }
  0x2f   :  { %v67_v27 = vadd.f32 %v332_v22, %v60_v24  ;;  %vm92_vm3 = vmand %vm45_vm1, %vm91_vm14  ;;  %v338_v32 = vsel %vm85_vm15, 1.0, %v429_v7  ;;  %v132_v40 = vstv %s351_s10  ;;  %vm126_vm10 = vcmp.eq.s32.totalorder %v463_v9, %v125_v37 }
  0x30   :  { %vm99_vm5 = vmand %vm46_vm2, %vm98_vm0  ;;  %v340_v35 = vsel %vm92_vm3, 1.0, %v429_v7  ;;  %v139_v43 = vstv %s353_s11  ;;  %vm133_vm12 = vcmp.eq.s32.totalorder %v463_v9, %v132_v40  ;;  %v146_v46 = vstv %s355_s12 }
  0x31   :  { %v74_v30 = vadd.f32 %v334_v26, %v67_v27  ;;  %vm106_vm7 = vmand %vm45_vm1, %vm105_vm4  ;;  %v342_v38 = vsel %vm99_vm5, 1.0, %v429_v7  ;;  %vm140_vm14 = vcmp.eq.s32.totalorder %v463_v9, %v139_v43  ;;  %v153_v49 = vstv %s357_s13 }
  0x32   :  { %vm113_vm9 = vmand %vm46_vm2, %vm112_vm6  ;;  %v344_v41 = vsel %vm106_vm7, 1.0, %v429_v7  ;;  %vm147_vm0 = vcmp.eq.s32.totalorder %v463_v9, %v146_v46  ;;  %vm154_vm4 = vcmp.eq.s32.totalorder %v463_v9, %v153_v49  ;;  %vm167_vm7 = vcmask 195584  }
  0x33   :  { %v81_v33 = vadd.f32 %v336_v29, %v74_v30  ;;  %vm120_vm11 = vmand %vm45_vm1, %vm119_vm8  ;;  %v346_v44 = vsel %vm113_vm9, 1.0, %v429_v7  ;;  %vm245_vm8 = vcmask 130048  }
  0x34   :  { %vm127_vm13 = vmand %vm46_vm2, %vm126_vm10  ;;  %v348_v47 = vsel %vm120_vm11, 1.0, %v429_v7 }
  0x35   :  { %v88_v36 = vadd.f32 %v338_v32, %v81_v33  ;;  %vm134_vm15 = vmand %vm45_vm1, %vm133_vm12  ;;  %v350_v50 = vsel %vm127_vm13, 1.0, %v429_v7 }
  0x36   :  { %vm141_vm3 = vmand %vm46_vm2, %vm140_vm14  ;;  %v352_v52 = vsel %vm134_vm15, 1.0, %v429_v7 }
  0x37   :  { %v95_v39 = vadd.f32 %v340_v35, %v88_v36  ;;  %vm148_vm5 = vmand %vm45_vm1, %vm147_vm0  ;;  %v354_v54 = vsel %vm141_vm3, 1.0, %v429_v7  ;;  %vm431_vm1 = vmmov 0  }
  0x38   :  { %vm155_vm6 = vmand %vm46_vm2, %vm154_vm4  ;;  %v356_v56 = vsel %vm148_vm5, 1.0, %v429_v7  ;;  %368 = vmatprep.mubr.msk.f32.mxu1 %vm431_vm1, %v429_v7  ;;  %vm243_vm2 = vcmp.eq.s32.totalorder %v463_v9, 10 }
  0x39   :  { %v102_v42 = vadd.f32 %v342_v38, %v95_v39  ;;  %v358_v58 = vsel %vm155_vm6, 1.0, %v429_v7 }
  0x3b   :  { %v109_v45 = vadd.f32 %v344_v41, %v102_v42 }
  0x3d   :  { %v116_v48 = vadd.f32 %v346_v44, %v109_v45 }
  0x3f   :  { %v123_v51 = vadd.f32 %v348_v47, %v116_v48 }
  0x41   :  { %v130_v53 = vadd.f32 %v350_v50, %v123_v51 }
  0x43   :  { %v137_v55 = vadd.f32 %v352_v52, %v130_v53 }
  0x45   :  { %v144_v57 = vadd.f32 %v354_v54, %v137_v55 }
  0x47   :  { %v151_v59 = vadd.f32 %v356_v56, %v144_v57 }
  0x49   :  { %v158_v60 = vadd.f32 %v358_v58, %v151_v59 }
  0x4b   :  { %359 = vmatmul.mubr.msk.f32.vlgmr.msra.gmra.mrb[0].mxu0 %vm167_vm7, %v158_v60 }
 0x11e   :  { %v237_v1 = vpop.f32.mrb[0].mxu0 }
 0x11f   :  { %320 = vst [vmem:[%s566_s2 + $0x2] sm:$0x3] %v237_v1  ;;  %v239_v2 = vpop.f32.mrb[1].mxu0 }
 0x120   :  { %385 = vtanh.f32 %v239_v2 }
 0x12a   :  { %v386_v3 = vpop.eup %385 }
 0x12b   :  { %v244_v4 = vsel %vm243_vm2, 1.0, %v386_v3 }
 0x12c   :  { %369 = vmatmul.mubr.msk.f32.vlgmr.msra.gmra.mrb[0].mxu1 %vm245_vm8, %v244_v4 }
 0x1ff   :  { %v315_v5 = vpop.f32.mrb[0].mxu1 }
 0x200   :  { %319 = vst [vmem:[%s566_s2] sm:$0x3] %v315_v5  ;;  %v370_v6 = vpop.f32.mrb[1].mxu1 }
 0x201   :  { %325 = vsyncpa [#allocation3], 1 }
 0x202   :  { %326 = vsyncpa [#allocation4], 1 }

</bundles_post_ra>
